<compile_context>
chip_gen: v5e
topology: v5e:2x2
jax: 0.10.0
libtpu: 0.0.40
codegen_flags: <defaults>
</compile_context>

<pallas_src>
import functools

import jax
import jax.numpy as jnp
from jax.experimental import pallas as pl
from jax.experimental.pallas import tpu as pltpu


# ---------------------------------------------------------------------------
# Generation-aware sizing: v5e/v6e have 128 MiB VMEM; v7x has 64 MiB per TC.
# ---------------------------------------------------------------------------
def _vmem_capacity_bytes():
    try:
        return int(pltpu.get_tpu_info().vmem_capacity_bytes)
    except Exception:
        return 64 * 1024 * 1024                 # conservative: v7x per-TC VMEM


def _tile_budget():
    cap = _vmem_capacity_bytes()
    if cap >= 100 * 1024 * 1024:                # v5e / v6e (128 MiB physical)
        return 8192, 64 * 1024 * 1024           # (hw_tile target, vmem limit)
    return 4096, 32 * 1024 * 1024               # v7x (64 MiB per TensorCore)


def _pick_bc_tile(bc, target=256):
    """Sublane-axis tile.  Guarantees >=2 blocks whenever bc >= 16 (so both
    v7x TensorCores get streaming work) and never exceeds `target` (so an
    awkward B*C can't blow up block VMEM)."""
    if bc < 16:
        return bc                               # full dim is always legal
    cap = min(target, max(8, (bc // 2) // 8 * 8))
    best = None
    for d in range(8, cap + 1, 8):              # sublane dim: multiple of 8
        if bc % d == 0:
            best = d
    return best if best is not None else cap    # fallback: partial last block


def _pick_hw_tile(hw, target):
    """Lane-axis tile.  Prefers an exact divisor of hw (no masking anywhere);
    otherwise uses `target` and masks ONLY the tail block."""
    if hw <= target:
        return hw                               # full dim
    best = None
    for d in range(128, target + 1, 128):       # lane dim: multiple of 128
        if hw % d == 0:
            best = d
    if best is not None and best >= target // 2:
        return best
    return target


# ---------------------------------------------------------------------------
# Kernel 1 (two-kernel path): streaming global avg/max pooling.
#   x_ref   : (bc_tile, hw_tile)  native dtype   (view of x as (B*C, H*W))
#   sum_ref : (bc_tile, 1) f32    resident accumulator (spatial sum)
#   max_ref : (bc_tile, 1) f32    resident accumulator (running spatial max)
# ---------------------------------------------------------------------------
def _pool_kernel(x_ref, sum_ref, max_ref, *, hw_total, hw_tile):
    j = pl.program_id(1)

    x_nat = x_ref[...]                          # native dtype (max is exact)
    xf = x_nat.astype(jnp.float32)              # f32 accumulation for the sum

    def accum(x_sum, x_max):
        part_sum = jnp.sum(x_sum, axis=1, keepdims=True)                # f32
        part_max = jnp.max(x_max, axis=1, keepdims=True).astype(jnp.float32)

        @pl.when(j == 0)
        def _():
            sum_ref[...] = part_sum
            max_ref[...] = part_max

        @pl.when(j > 0)
        def _():
            sum_ref[...] = sum_ref[...] + part_sum
            max_ref[...] = jnp.maximum(max_ref[...], part_max)

    rem = hw_total % hw_tile
    if rem == 0:                                # trace-time: no mask anywhere
        accum(xf, x_nat)
    else:                                       # mask ONLY the tail block
        last = pl.num_programs(1) - 1

        @pl.when(j < last)
        def _():
            accum(xf, x_nat)

        @pl.when(j == last)
        def _():
            lane = jax.lax.broadcasted_iota(jnp.int32, xf.shape, 1)
            valid = lane < rem
            accum(jnp.where(valid, xf, 0.0),
                  jnp.where(valid, x_nat, jnp.asarray(-jnp.inf, x_nat.dtype)))


# ---------------------------------------------------------------------------
# Shared MLP epilogue math: sigmoid(relu(a@W1^T)@W2^T + relu(m@W1^T)@W2^T).
# The second conv is linear, so it is applied once to the sum of the two
# ReLU'd hidden activations.  Weights are contracted as stored by PyTorch.
# ---------------------------------------------------------------------------
def _mlp_sigmoid(avg, mx, w1, w2):
    dn = (((1,), (1,)), ((), ()))               # A @ B^T (contract over C/Cr)
    h = (jnp.maximum(jax.lax.dot_general(avg, w1, dn,
                                         preferred_element_type=jnp.float32), 0.0)
         + jnp.maximum(jax.lax.dot_general(mx, w1, dn,
                                           preferred_element_type=jnp.float32), 0.0))
    y = jax.lax.dot_general(h, w2, dn, preferred_element_type=jnp.float32)
    return jax.nn.sigmoid(y)


# ---------------------------------------------------------------------------
# Kernel 2 (two-kernel path): tiny fc + sigmoid epilogue.
#   sum_ref/max_ref : (B, C) f32, w1_ref : (Cr, C), w2_ref : (C, Cr)
# ---------------------------------------------------------------------------
def _fc_kernel(sum_ref, max_ref, w1_ref, w2_ref, o_ref, *, inv_hw):
    avg = sum_ref[...] * jnp.float32(inv_hw)
    mx = max_ref[...]
    w1 = w1_ref[...].astype(jnp.float32)
    w2 = w2_ref[...].astype(jnp.float32)
    o_ref[...] = _mlp_sigmoid(avg, mx, w1, w2).astype(o_ref.dtype)


# ---------------------------------------------------------------------------
# Fused kernel (small-problem path): pooling + fc + sigmoid in one launch.
#   x_ref : (B, C, hw_tile) native dtype, scratch sum/max : (B, C) f32
# ---------------------------------------------------------------------------
def _fused_kernel(x_ref, w1_ref, w2_ref, o_ref, sum_sc, max_sc,
                  *, hw_total, hw_tile, inv_hw):
    j = pl.program_id(0)
    last = pl.num_programs(0) - 1

    x_nat = x_ref[...]
    xf = x_nat.astype(jnp.float32)

    def accum(x_sum, x_max):
        part_sum = jnp.sum(x_sum, axis=2)                               # (B,C)
        part_max = jnp.max(x_max, axis=2).astype(jnp.float32)           # (B,C)

        @pl.when(j == 0)
        def _():
            sum_sc[...] = part_sum
            max_sc[...] = part_max

        @pl.when(j > 0)
        def _():
            sum_sc[...] = sum_sc[...] + part_sum
            max_sc[...] = jnp.maximum(max_sc[...], part_max)

    rem = hw_total % hw_tile
    if rem == 0:
        accum(xf, x_nat)
    else:
        @pl.when(j < last)
        def _():
            accum(xf, x_nat)

        @pl.when(j == last)
        def _():
            lane = jax.lax.broadcasted_iota(jnp.int32, xf.shape, 2)
            valid = lane < rem
            accum(jnp.where(valid, xf, 0.0),
                  jnp.where(valid, x_nat, jnp.asarray(-jnp.inf, x_nat.dtype)))

    @pl.when(j == last)
    def _():
        avg = sum_sc[...] * jnp.float32(inv_hw)
        mx = max_sc[...]
        w1 = w1_ref[...].astype(jnp.float32)
        w2 = w2_ref[...].astype(jnp.float32)
        o_ref[...] = _mlp_sigmoid(avg, mx, w1, w2).astype(o_ref.dtype)


# ---------------------------------------------------------------------------
# Wrapper matching ChannelAttention.forward.
#   x : (B, C, H, W); w1 = conv1.weight[:,:,0,0] (Cr, C); w2 = conv2.weight
#   [:,:,0,0] (C, Cr).  Returns (B, C, 1, 1).
# ---------------------------------------------------------------------------
def channel_attention(x, w1, w2, *, hw_tile_target=None):
    B, C, H, W = x.shape
    Cr = w1.shape[0]
    BC, HW = B * C, H * W

    hw_target, vmem_limit = _tile_budget()
    if hw_tile_target is not None:
        hw_target = hw_tile_target
    hw_tile = _pick_hw_tile(HW, hw_target)
    hw_blocks = pl.cdiv(HW, hw_tile)
    inv_hw = 1.0 / float(HW)
    itemsize = jnp.dtype(x.dtype).itemsize

    # Fused single-launch path: B*C fits one block and the streaming pass is
    # too small for a cross-TensorCore split to matter; saves a kernel launch
    # plus an HBM round trip of the pooled stats.
    fuse = BC < 16 or (BC <= 256 and BC * HW * itemsize <= 8 * 1024 * 1024)

    if fuse:
        x3 = x.reshape(B, C, HW)                # free NCHW reshape
        attn = pl.pallas_call(
            functools.partial(_fused_kernel, hw_total=HW, hw_tile=hw_tile,
                              inv_hw=inv_hw),
            grid=(hw_blocks,),
            in_specs=[
                pl.BlockSpec((B, C, hw_tile), lambda j: (0, 0, j)),
                pl.BlockSpec((Cr, C), lambda j: (0, 0)),   # resident weights
                pl.BlockSpec((C, Cr), lambda j: (0, 0)),
            ],
            out_specs=pl.BlockSpec((B, C), lambda j: (0, 0)),
            out_shape=jax.ShapeDtypeStruct((B, C), x.dtype),
            scratch_shapes=[pltpu.VMEM((B, C), jnp.float32),
                            pltpu.VMEM((B, C), jnp.float32)],
            compiler_params=pltpu.CompilerParams(
                dimension_semantics=("arbitrary",),
                vmem_limit_bytes=vmem_limit,
            ),
            cost_estimate=pl.CostEstimate(
                flops=2 * BC * HW + 6 * B * C * Cr,
                transcendentals=B * C,
                bytes_accessed=BC * HW * itemsize + (2 * C * Cr + B * C) * 4,
            ),
        )(x3, w1, w2)
        return attn.reshape(B, C, 1, 1)

    # -------- Two-kernel streaming path (large B*C) --------
    bc_tile = _pick_bc_tile(BC)
    grid = (pl.cdiv(BC, bc_tile), hw_blocks)    # reduction (HW) axis innermost
    x2 = x.reshape(BC, HW)                      # free NCHW reshape, lane-dense

    sum_out, max_out = pl.pallas_call(
        functools.partial(_pool_kernel, hw_total=HW, hw_tile=hw_tile),
        grid=grid,
        in_specs=[pl.BlockSpec((bc_tile, hw_tile), lambda i, j: (i, j))],
        out_specs=(
            pl.BlockSpec((bc_tile, 1), lambda i, j: (i, 0)),
            pl.BlockSpec((bc_tile, 1), lambda i, j: (i, 0)),
        ),
        out_shape=(
            jax.ShapeDtypeStruct((BC, 1), jnp.float32),
            jax.ShapeDtypeStruct((BC, 1), jnp.float32),
        ),
        compiler_params=pltpu.CompilerParams(
            dimension_semantics=("parallel", "arbitrary"),
            vmem_limit_bytes=vmem_limit,
        ),
        cost_estimate=pl.CostEstimate(
            flops=2 * BC * HW,
            transcendentals=0,
            bytes_accessed=BC * HW * itemsize + 2 * BC * 4,
        ),
    )(x2)

    # (B*C, 1) -> (B, C): free row-major reshape between the two calls.
    sum_bc = sum_out.reshape(B, C)
    max_bc = max_out.reshape(B, C)

    attn = pl.pallas_call(
        functools.partial(_fc_kernel, inv_hw=inv_hw),
        out_shape=jax.ShapeDtypeStruct((B, C), x.dtype),
        in_specs=[pl.BlockSpec(memory_space=pltpu.MemorySpace.VMEM)] * 4,
        out_specs=pl.BlockSpec(memory_space=pltpu.MemorySpace.VMEM),
        cost_estimate=pl.CostEstimate(
            flops=2 * (2 * B * C * Cr + B * Cr * C),
            transcendentals=B * C,
            bytes_accessed=(2 * B * C + 2 * C * Cr + B * C) * 4,
        ),
    )(sum_bc, max_bc, w1, w2)

    return attn.reshape(B, C, 1, 1)


# ---------------------------------------------------------------------------
# Pure-JAX reference matching the PyTorch forward.
# ---------------------------------------------------------------------------
def reference(x, w1, w2):
    avg = jnp.mean(x, axis=(2, 3))  # (B, C)
    mx = jnp.max(x, axis=(2, 3))    # (B, C)

    def fc(p):
        return jnp.maximum(p @ w1.T, 0.0) @ w2.T

    return jax.nn.sigmoid(fc(avg) + fc(mx))[:, :, None, None]


if __name__ == "__main__":
    def make_case(key, B, C, H, W, reduction_ratio=16):
        Cr = max(C // reduction_ratio, 4)
        kx, k1, k2 = jax.random.split(key, 3)
        x = jax.random.normal(kx, (B, C, H, W), dtype=jnp.float32)
        w1 = jax.random.normal(k1, (Cr, C), dtype=jnp.float32) * (2.0 / C) ** 0.5
        w2 = jax.random.normal(k2, (C, Cr), dtype=jnp.float32) * (2.0 / Cr) ** 0.5
        return x, w1, w2

    k1, k2, k3 = jax.random.split(jax.random.PRNGKey(0), 3)

    # 1) Module-default-like config (in_channels=4): fused single-launch path.
    x, w1, w2 = make_case(k1, 2, 4, 16, 16)
    out = jax.block_until_ready(channel_attention(x, w1, w2))
    assert out.shape == (2, 4, 1, 1)
    assert jnp.allclose(out, reference(x, w1, w2), atol=1e-5, rtol=1e-5)

    # 2) Wider channels: two-kernel streaming path, >=2 BC blocks, exact tiles.
    x, w1, w2 = make_case(k2, 2, 160, 32, 32)
    out = jax.block_until_ready(channel_attention(x, w1, w2))
    assert jnp.allclose(out, reference(x, w1, w2), atol=1e-5, rtol=1e-5)

    # 3) Non-divisible spatial extent: exercises the gated tail-mask path.
    x, w1, w2 = make_case(k3, 2, 160, 13, 13)
    out = jax.block_until_ready(channel_attention(x, w1, w2, hw_tile_target=128))
    assert jnp.allclose(out, reference(x, w1, w2), atol=1e-5, rtol=1e-5)

    print("KERNEL_OK")
</pallas_src>

<mosaic_0001>
module attributes {stable_mosaic.version = 11 : i64} {
  func.func @_fused_kernel(%arg0: i32, %arg1: memref<2x4x256xf32, #tpu.memory_space<vmem>>, %arg2: memref<4x4xf32, #tpu.memory_space<vmem>>, %arg3: memref<4x4xf32, #tpu.memory_space<vmem>>, %arg4: memref<2x4xf32, #tpu.memory_space<vmem>>, %arg5: memref<2x4xf32, #tpu.memory_space<vmem>>, %arg6: memref<2x4xf32, #tpu.memory_space<vmem>>) attributes {dimension_semantics = [#tpu.dimension_semantics<arbitrary>], iteration_bounds = array<i64: 1>, scalar_prefetch = 0 : i64, scratch_operands = 2 : i64, tpu.core_type = #tpu.core_type<tc>, window_params = [{transform_indices = @transform_0, window_bounds = array<i64: 2, 4, 256>}, {pipeline_mode = #tpu.pipeline_mode<synchronous>, transform_indices = @transform_1, window_bounds = array<i64: 4, 4>}, {pipeline_mode = #tpu.pipeline_mode<synchronous>, transform_indices = @transform_2, window_bounds = array<i64: 4, 4>}, {pipeline_mode = #tpu.pipeline_mode<synchronous>, transform_indices = @transform_3, window_bounds = array<i64: 2, 4>}]} {
    %c0 = arith.constant 0 : index
    %c0_0 = arith.constant 0 : index
    %c0_1 = arith.constant 0 : index
    %0 = vector.load %arg1[%c0, %c0_0, %c0_1] : memref<2x4x256xf32, #tpu.memory_space<vmem>>, vector<2x4x256xf32>
    %cst = arith.constant dense<0.000000e+00> : vector<2x4xf32>
    %1 = vector.multi_reduction <add>, %0, %cst [2] : vector<2x4x256xf32> to vector<2x4xf32>
    %cst_2 = arith.constant dense<0xFF800000> : vector<2x4xf32>
    %2 = vector.multi_reduction <maximumf>, %0, %cst_2 [2] : vector<2x4x256xf32> to vector<2x4xf32>
    %c0_i32 = arith.constant 0 : i32
    %3 = arith.cmpi eq, %arg0, %c0_i32 : i32
    %4 = arith.extui %3 : i1 to i32
    %c0_i32_3 = arith.constant 0 : i32
    %5 = arith.cmpi ne, %4, %c0_i32_3 : i32
    scf.if %5 {
      %c0_8 = arith.constant 0 : index
      %c0_9 = arith.constant 0 : index
      %12 = vector.load %arg5[%c0_8, %c0_9] : memref<2x4xf32, #tpu.memory_space<vmem>>, vector<2x4xf32>
      tpu.vector_store %arg5[%c0_8, %c0_9], %1 {strides = array<i32>} : memref<2x4xf32, #tpu.memory_space<vmem>>, vector<2x4xf32>,
      %c0_10 = arith.constant 0 : index
      %c0_11 = arith.constant 0 : index
      %13 = vector.load %arg6[%c0_10, %c0_11] : memref<2x4xf32, #tpu.memory_space<vmem>>, vector<2x4xf32>
      tpu.vector_store %arg6[%c0_10, %c0_11], %2 {strides = array<i32>} : memref<2x4xf32, #tpu.memory_space<vmem>>, vector<2x4xf32>,
    } else {
    }
    %c0_i32_4 = arith.constant 0 : i32
    %6 = arith.cmpi sgt, %arg0, %c0_i32_4 : i32
    %7 = arith.extui %6 : i1 to i32
    %c0_i32_5 = arith.constant 0 : i32
    %8 = arith.cmpi ne, %7, %c0_i32_5 : i32
    scf.if %8 {
      %c0_8 = arith.constant 0 : index
      %c0_9 = arith.constant 0 : index
      %12 = vector.load %arg5[%c0_8, %c0_9] : memref<2x4xf32, #tpu.memory_space<vmem>>, vector<2x4xf32>
      %13 = arith.addf %12, %1 : vector<2x4xf32>
      %c0_10 = arith.constant 0 : index
      %c0_11 = arith.constant 0 : index
      %14 = vector.load %arg5[%c0_10, %c0_11] : memref<2x4xf32, #tpu.memory_space<vmem>>, vector<2x4xf32>
      tpu.vector_store %arg5[%c0_10, %c0_11], %13 {strides = array<i32>} : memref<2x4xf32, #tpu.memory_space<vmem>>, vector<2x4xf32>,
      %c0_12 = arith.constant 0 : index
      %c0_13 = arith.constant 0 : index
      %15 = vector.load %arg6[%c0_12, %c0_13] : memref<2x4xf32, #tpu.memory_space<vmem>>, vector<2x4xf32>
      %16 = arith.maximumf %15, %2 : vector<2x4xf32>
      %c0_14 = arith.constant 0 : index
      %c0_15 = arith.constant 0 : index
      %17 = vector.load %arg6[%c0_14, %c0_15] : memref<2x4xf32, #tpu.memory_space<vmem>>, vector<2x4xf32>
      tpu.vector_store %arg6[%c0_14, %c0_15], %16 {strides = array<i32>} : memref<2x4xf32, #tpu.memory_space<vmem>>, vector<2x4xf32>,
    } else {
    }
    %c0_i32_6 = arith.constant 0 : i32
    %9 = arith.cmpi eq, %arg0, %c0_i32_6 : i32
    %10 = arith.extui %9 : i1 to i32
    %c0_i32_7 = arith.constant 0 : i32
    %11 = arith.cmpi ne, %10, %c0_i32_7 : i32
    scf.if %11 {
      %c0_8 = arith.constant 0 : index
      %c0_9 = arith.constant 0 : index
      %12 = vector.load %arg5[%c0_8, %c0_9] : memref<2x4xf32, #tpu.memory_space<vmem>>, vector<2x4xf32>
      %cst_10 = arith.constant 3.906250e-03 : f32
      %13 = vector.broadcast %cst_10 : f32 to vector<2x4xf32>
      %14 = arith.mulf %12, %13 : vector<2x4xf32>
      %c0_11 = arith.constant 0 : index
      %c0_12 = arith.constant 0 : index
      %15 = vector.load %arg6[%c0_11, %c0_12] : memref<2x4xf32, #tpu.memory_space<vmem>>, vector<2x4xf32>
      %c0_13 = arith.constant 0 : index
      %c0_14 = arith.constant 0 : index
      %16 = vector.load %arg2[%c0_13, %c0_14] : memref<4x4xf32, #tpu.memory_space<vmem>>, vector<4x4xf32>
      %c0_15 = arith.constant 0 : index
      %c0_16 = arith.constant 0 : index
      %17 = vector.load %arg3[%c0_15, %c0_16] : memref<4x4xf32, #tpu.memory_space<vmem>>, vector<4x4xf32>
      %cst_17 = arith.constant dense<0.000000e+00> : vector<2x4xf32>
      %18 = tpu.matmul %14, %16, %cst_17 {dimension_numbers = #tpu.dot_dimension_numbers<[1], [1], [0], [0], [0, 0, 1, 0], [], []>} : vector<2x4xf32>, vector<4x4xf32>, vector<2x4xf32> -> vector<2x4xf32>
      %cst_18 = arith.constant 0.000000e+00 : f32
      %19 = vector.broadcast %cst_18 : f32 to vector<2x4xf32>
      %20 = arith.maximumf %18, %19 : vector<2x4xf32>
      %cst_19 = arith.constant dense<0.000000e+00> : vector<2x4xf32>
      %21 = tpu.matmul %15, %16, %cst_19 {dimension_numbers = #tpu.dot_dimension_numbers<[1], [1], [0], [0], [0, 0, 1, 0], [], []>} : vector<2x4xf32>, vector<4x4xf32>, vector<2x4xf32> -> vector<2x4xf32>
      %cst_20 = arith.constant 0.000000e+00 : f32
      %22 = vector.broadcast %cst_20 : f32 to vector<2x4xf32>
      %23 = arith.maximumf %21, %22 : vector<2x4xf32>
      %24 = arith.addf %20, %23 : vector<2x4xf32>
      %cst_21 = arith.constant dense<0.000000e+00> : vector<2x4xf32>
      %25 = tpu.matmul %24, %17, %cst_21 {dimension_numbers = #tpu.dot_dimension_numbers<[1], [1], [0], [0], [0, 0, 1, 0], [], []>} : vector<2x4xf32>, vector<4x4xf32>, vector<2x4xf32> -> vector<2x4xf32>
      %26 = arith.negf %25 : vector<2x4xf32>
      %27 = math.exp %26 : vector<2x4xf32>
      %cst_22 = arith.constant 1.000000e+00 : f32
      %28 = vector.broadcast %cst_22 : f32 to vector<2x4xf32>
      %29 = arith.addf %28, %27 : vector<2x4xf32>
      %30 = arith.divf %28, %29 : vector<2x4xf32>
      %c0_23 = arith.constant 0 : index
      %c0_24 = arith.constant 0 : index
      %31 = vector.load %arg4[%c0_23, %c0_24] : memref<2x4xf32, #tpu.memory_space<vmem>>, vector<2x4xf32>
      tpu.vector_store %arg4[%c0_23, %c0_24], %30 {strides = array<i32>} : memref<2x4xf32, #tpu.memory_space<vmem>>, vector<2x4xf32>,
    } else {
    }
    return
  }
  func.func @transform_0(%arg0: i32) -> (i32, i32, i32) {
    %c0_i32 = arith.constant 0 : i32
    %c0_i32_0 = arith.constant 0 : i32
    %c0_i32_1 = arith.constant 0 : i32
    return %c0_i32, %c0_i32_0, %arg0 : i32, i32, i32
  }
  func.func @transform_1(%arg0: i32) -> (i32, i32) {
    %c0_i32 = arith.constant 0 : i32
    %c0_i32_0 = arith.constant 0 : i32
    %c0_i32_1 = arith.constant 0 : i32
    return %c0_i32, %c0_i32_0 : i32, i32
  }
  func.func @transform_2(%arg0: i32) -> (i32, i32) {
    %c0_i32 = arith.constant 0 : i32
    %c0_i32_0 = arith.constant 0 : i32
    %c0_i32_1 = arith.constant 0 : i32
    return %c0_i32, %c0_i32_0 : i32, i32
  }
  func.func @transform_3(%arg0: i32) -> (i32, i32) {
    %c0_i32 = arith.constant 0 : i32
    %c0_i32_0 = arith.constant 0 : i32
    %c0_i32_1 = arith.constant 0 : i32
    return %c0_i32, %c0_i32_0 : i32, i32
  }
}

</mosaic_0001>

<bundles_post_ra>
// kernel: tpu_custom_call.1
= control target key start
LH: loop header
LB: loop body
LE: loop exit
PB: predicated region body
PF: predicated region fallthrough
CT: control target
= control target key end

     0   :  { %8 = vsyncpa [#allocation5], 0  ;;  %s453_s0 = inlined_call_operand.hbm [shape: f32[2,4,256], index: 0, kind: input, shape index: {}]   ;;  %s454_s1 = inlined_call_operand.hbm [shape: f32[4,4], index: 1, kind: input, shape index: {}]   ;;  %s455_s2 = inlined_call_operand.hbm [shape: f32[4,4], index: 2, kind: input, shape index: {}]   ;;  %s456_s3 = inlined_call_operand.hbm [shape: f32[2,4], index: 3, kind: output, shape index: {}]  }
   0x1   :  { %9 = vsyncpa [#allocation8], 0  ;;  %s29_s14 = sshll.u32 %s454_s1, 4  ;;  %s30_s14 = int_to_ptr.hbm [resolvable:$true] %s29_s14 }
   0x2   :  { %10 = vsyncpa [#allocation6], 0  ;;  %s398_s15 = smov [#allocation7]   ;;  %s15_s19 = sshll.u32 %s453_s0, 4  ;;  %s16_s19 = int_to_ptr.hbm [resolvable:$true] %s15_s19 }
   0x3   :  { %s31_s16 = sshll.u32 %s398_s15, 4  ;;  %s399_s20 = smov [#allocation4]   ;;  %s32_s16 = int_to_ptr.vmem [resolvable:$true] %s31_s16 }
   0x4   :  { %34 = dma.hbm_to_vmem [thread:$0]  %s30_s14, 64, %s32_s16, [#allocation8]  }
   0x5   :  { %s17_s21 = sshll.u32 %s399_s20, 4  ;;  %s400_s22 = smov 128   ;;  %s18_s21 = int_to_ptr.vmem [resolvable:$true] %s17_s21 }
   0x6   :  { %s401_s23 = smov 8   ;;  %s40_s1 = sshll.u32 %s455_s2, 4  ;;  %s41_s1 = int_to_ptr.hbm [resolvable:$true] %s40_s1 }
   0x7   :  { %23 = dma.hbm_to_vmem [thread:$0]  %s16_s19, 256, %s18_s21, [#allocation5], %s400_s22, %s400_s22, %s401_s23  }
   0x8   :  { %s402_s26 = smov [#allocation9]  }
   0x9   :  { %s42_s27 = sshll.u32 %s402_s26, 4  ;;  %s43_s27 = int_to_ptr.vmem [resolvable:$true] %s42_s27 }
   0xa   :  { %45 = dma.hbm_to_vmem [thread:$0]  %s41_s1, 64, %s43_s27, [#allocation8]  }
   0xb   :  { %392 = dma.done.wait [#allocation5], 256  }
   0xc   :  { %393 = vsyncadd [#allocation5], 4294967040 }
   0xd   :  { %394 = dma.done.wait [#allocation8], 128  }
   0xe   :  { %395 = vsyncadd [#allocation8], 4294967168  ;;  %v58_v0 = vld [vmem:[#allocation4] sm:$0xff]  ;;  %v59_v1 = vld [vmem:[#allocation4 + $0x8] sm:$0xff]  ;;  %vm73_vm0 = vcmask 1043456   ;;  %vm161_vm1 = vcmask 31744   ;;  %v111_v24 = vlaneseq }
   0xf   :  { %62 = vst [vmem:[#allocation1] ss:$2 sm:$0xff] %v58_v0  ;;  %v159_v22 = vld [vmem:[#allocation7] sm:$0xf]  ;;  %vm115_vm2 = vcmask 1041409   ;;  %vm118_vm3 = vcmask 25600  }
  0x10   :  { %66 = vst [vmem:[#allocation1 + $0x10] ss:$2 sm:$0xff] %v59_v1  ;;  %279 = vmatpush.xpose.msk.msra.mxu0 %vm161_vm1, %v159_v22  ;;  %281 = vmatpush.xpose.msk.msra.mxu1 %vm161_vm1, %v159_v22  ;;  %v112_v25 = vand.u32 127, %v111_v24  ;;  %v160_v38 = vld [vmem:[#allocation9] sm:$0xf]  ;;  %s403_s0 = smov [#allocation10]  }
  0x11   :  { %283 = vmatpush.xpose.msk.msra.mxu2 %vm161_vm1, %v160_v38  ;;  %s266_s2 = sshll.u32 %s403_s0, 4  ;;  %s268_s30 = sshll.u32 %s456_s3, 4  ;;  %s267_s2 = int_to_ptr.vmem [resolvable:$true] %s266_s2  ;;  %s269_s30 = int_to_ptr.hbm [resolvable:$true] %s268_s30 }
  0x16   :  { %v63_v2 = vld.sshfl [vmem:[#allocation1] sm:$0xff pattern:$0x75316420]  ;;  %v64_v3 = vld.sshfl [vmem:[#allocation1 + $0x8] sm:$0xff pattern:$0x75316420] }
  0x17   :  { %v74_v4 = vsel %vm73_vm0, %v63_v2, 0.0  ;;  %v75_v5 = vsel %vm73_vm0, %v64_v3, 0.0  ;;  %84 = vst [vmem:[#allocation1] ss:$2 sm:$0xff] %v58_v0 }
  0x18   :  { %v76_v6 = vadd.f32 %v75_v5, %v74_v4  ;;  %v67_v7 = vld.sshfl [vmem:[#allocation1 + $0x10] sm:$0xff pattern:$0x75316420]  ;;  %v68_v8 = vld.sshfl [vmem:[#allocation1 + $0x18] sm:$0xff pattern:$0x75316420] }
  0x19   :  { %88 = vst [vmem:[#allocation1 + $0x10] ss:$2 sm:$0xff] %v59_v1  ;;  %v79_v9 = vsel %vm73_vm0, %v67_v7, 0.0  ;;  %v80_v10 = vsel %vm73_vm0, %v68_v8, 0.0 }
  0x1a   :  { %77 = vadd.xlane.f32.xlu0 %v76_v6  ;;  %v81_v13 = vadd.f32 %v80_v10, %v79_v9 }
  0x1e   :  { %v85_v11 = vld.sshfl [vmem:[#allocation1] sm:$0xff pattern:$0x75316420]  ;;  %v86_v12 = vld.sshfl [vmem:[#allocation1 + $0x8] sm:$0xff pattern:$0x75316420] }
  0x1f   :  { %v95_v14 = vsel %vm73_vm0, %v85_v11, -inf  ;;  %v96_v15 = vsel %vm73_vm0, %v86_v12, -inf }
  0x20   :  { %v97_v16 = vmax.f32 %v95_v14, %v96_v15  ;;  %v89_v17 = vld.sshfl [vmem:[#allocation1 + $0x10] sm:$0xff pattern:$0x75316420]  ;;  %v90_v18 = vld.sshfl [vmem:[#allocation1 + $0x18] sm:$0xff pattern:$0x75316420] }
  0x21   :  { %v100_v19 = vsel %vm73_vm0, %v89_v17, -inf  ;;  %v101_v20 = vsel %vm73_vm0, %v90_v18, -inf }
  0x22   :  { %98 = vmax.xlane.f32.xlu1 %v97_v16  ;;  %82 = vadd.xlane.f32.xlu0 %v81_v13  ;;  %v102_v21 = vmax.f32 %v100_v19, %v101_v20 }
  0x2a   :  { %103 = vmax.xlane.f32.xlu1 %v102_v21 }
  0x8d   :  { %v78_v23 = vpop.xlane.xlu0 %77 }
  0x8e   :  { %v113_v28 = vperm.slane %v78_v23, %v112_v25 }
  0x95   :  { %v99_v26 = vpop.xlane.xlu1 %98  ;;  %v83_v27 = vpop.xlane.xlu0 %82 }
  0x96   :  { %v114_v29 = vperm.slane %v83_v27, %v112_v25  ;;  %v122_v32 = vperm.slane %v99_v26, %v112_v25 }
  0x98   :  { %v116_v30 = vsel %vm115_vm2, %v114_v29, %v113_v28 }
  0x99   :  { %119 = vst.msk [vmem:[#allocation2] sm:$0x3] %vm118_vm3, %v116_v30 }
  0x9d   :  { %v104_v31 = vpop.xlane.xlu1 %103 }
  0x9e   :  { %v123_v33 = vperm.slane %v104_v31, %v112_v25 }
  0xa0   :  { %v124_v34 = vsel %vm115_vm2, %v123_v33, %v122_v32  ;;  %v156_v35 = vld [vmem:[#allocation2] sm:$0x3] }
  0xa1   :  { %126 = vst.msk [vmem:[#allocation3] sm:$0x3] %vm118_vm3, %v124_v34  ;;  %v157_v36 = vmul.f32 0.00390625, %v156_v35 }
  0xa3   :  { %280 = vmatmul.msk.f32.vlgmr.msra.gmra.mxu0 %vm161_vm1, %v157_v36 }
  0xa8   :  { %v158_v37 = vld [vmem:[#allocation3] sm:$0x3] }
  0xa9   :  { %282 = vmatmul.msk.f32.vlgmr.msra.gmra.mxu1 %vm161_vm1, %v158_v37 }
 0x120   :  { %v185_v39 = vpop.f32.mrf.mxu0 }
 0x121   :  { %v188_v41 = vmax.f32 %v185_v39, 0.0 }
 0x126   :  { %v209_v40 = vpop.f32.mrf.mxu1 }
 0x127   :  { %v212_v42 = vmax.f32 %v209_v40, 0.0 }
 0x129   :  { %v213_v43 = vadd.f32 %v212_v42, %v188_v41 }
 0x12b   :  { %284 = vmatmul.msk.f32.vlgmr.msra.gmra.mxu2 %vm161_vm1, %v213_v43 }
 0x1ae   :  { %v237_v44 = vpop.f32.mrf.mxu2 }
 0x1af   :  { %v285_v45 = vmul.f32 -1.442695, %v237_v44 }
 0x1b1   :  { %292 = vpow2.f32 %v285_v45 }
 0x1b7   :  { %v293_v46 = vpop.eup %292 }
 0x1b8   :  { %v243_v47 = vadd.f32 1.0, %v293_v46 }
 0x1ba   :  { %294 = vrcp.f32 %v243_v47  ;;  %v255_v51 = vand.u32 2147483648, %v243_v47  ;;  %v253_v53 = vand.u32 2147483647, %v243_v47  ;;  %vm249_vm5 = vweird.f32 %v243_v47 }
 0x1bc   :  { %v256_v55 = vor.u32 1.1754944e-38, %v255_v51  ;;  %vm254_vm7 = vcmp.eq.f32.partialorder %v253_v53, 8.507059e+37 }
 0x1c0   :  { %v295_v48 = vpop.eup %294 }
 0x1c1   :  { %v245_v49 = vmul.f32 %v295_v48, %v243_v47  ;;  %vm250_vm4 = vweird.f32 %v295_v48 }
 0x1c2   :  { %vm251_vm6 = vmor %vm249_vm5, %vm250_vm4 }
 0x1c3   :  { %v246_v50 = vsub.f32 1.0, %v245_v49 }
 0x1c5   :  { %v247_v52 = vmul.f32 %v295_v48, %v246_v50 }
 0x1c7   :  { %v248_v54 = vadd.f32 %v295_v48, %v247_v52 }
 0x1c9   :  { %v252_v56 = vsel %vm251_vm6, %v295_v48, %v248_v54 }
 0x1ca   :  { %v257_v57 = vsel %vm254_vm7, %v256_v55, %v252_v56 }
 0x1cb   :  { %260 = vst.msk [vmem:[#allocation10] sm:$0x3] %vm118_vm3, %v257_v57 }
 0x1cc   :  { %271 = dma.vmem_to_hbm [thread:$0]  %s267_s2, 32, %s269_s30, [#allocation6]  }
 0x1cd   :  { %396 = dma.done.wait [#allocation6], 32  }
 0x1ce   :  { %397 = vsyncadd [#allocation6], 4294967264 }
 0x1cf   :  { %276 = vsyncpa [#allocation5], 1 }
 0x1d0   :  { %277 = vsyncpa [#allocation8], 1 }
 0x1d1   :  { %278 = vsyncpa [#allocation6], 1 }

</bundles_post_ra>
